<compile_context>
chip_gen: v5e
topology: v5e:2x2
jax: 0.10.0
libtpu: 0.0.40
codegen_flags: <defaults>
</compile_context>

<pallas_src>
import functools

import jax
import jax.numpy as jnp
from jax import lax
from jax.experimental import pallas as pl
from jax.experimental.pallas import tpu as pltpu


HP = 128  # padded head width (lanes) -> lane-dense stores and vreg-aligned slices


def prepare_qkv_weights(wk, wq, wv):
    """One-time weight transform (module-init analogue, hoisted out of the fwd path).

    wk/wq/wv: (C, H) pre-transposed nn.Linear weights (forward is x @ W).
    Returns wqkv: (C, 3*HP) = [Wk | scale*Wq | Wv], each segment zero-padded to HP lanes.
    The 1/sqrt(C) attention scale is folded into Wq here (free: weight-side transform).
    """
    C, H = wk.shape
    assert H <= HP, "head_size must be <= 128 for this padding scheme"
    scale = float(C) ** (-0.5)

    def pad(w):
        return jnp.pad(w, ((0, 0), (0, HP - H)))

    return jnp.concatenate([pad(wk), pad(wq * scale), pad(wv)], axis=1)  # (C, 3*HP)


def _attn_head_kernel(x_ref, wqkv_ref, o_ref, *, batch_block, seq_len):
    bb, T = batch_block, seq_len

    # Fused QKV projection: one (bb*T, C) x (C, 3*HP) MXU matmul, f32 operands + acc.
    qkv = jnp.dot(x_ref[...], wqkv_ref[...],
                  preferred_element_type=jnp.float32)          # (bb*T, 3*HP)
    qkv = qkv.reshape(bb, T, 3 * HP)                           # T rows sublane-aligned

    # 128-lane-aligned (vreg-boundary) slices: no lane shuffles.
    k = qkv[:, :, 0:HP]                                        # (bb, T, HP)
    q = qkv[:, :, HP:2 * HP]                                   # scale already in Wq
    v = qkv[:, :, 2 * HP:3 * HP]

    # Scores q @ k^T; zero-padded lanes contribute exact zeros to the contraction.
    s = jnp.einsum('bqh,bkh->bqk', q, k,
                   preferred_element_type=jnp.float32)         # (bb, T, T)

    # Causal mask, built once per grid step (outside any loop).
    row = lax.broadcasted_iota(jnp.int32, (T, T), 0)
    col = lax.broadcasted_iota(jnp.int32, (T, T), 1)
    causal = col <= row
    neg_big = jnp.float32(-1e30)  # finite "-inf": exp() underflows to exactly 0
    s = jnp.where(causal[None, :, :], s, neg_big)

    # Numerically stable softmax, elementwise math in f32; reciprocal on the EUP.
    m = jnp.max(s, axis=-1, keepdims=True)
    p = jnp.exp(s - m)
    denom = jnp.sum(p, axis=-1, keepdims=True)
    probs = p * pl.reciprocal(denom, approx=True)

    # dropout: identity (inference mode)

    out = jnp.einsum('bqk,bkh->bqh', probs, v,
                     preferred_element_type=jnp.float32)       # (bb, T, HP)

    # Single lane-dense, full-block store (padded lanes of v are zero -> output padded
    # lanes are zero; wrapper slices them off).
    o_ref[...] = out.reshape(bb * T, HP).astype(o_ref.dtype)


def _default_batch_block(B):
    """>= 2 grid steps only when the device has >= 2 TensorCores (v7x); else grid=(1,)."""
    try:
        n_tc = int(getattr(jax.devices()[0], "num_cores", 1))
    except Exception:
        n_tc = 1
    if n_tc >= 2 and B % 2 == 0:
        return B // 2
    return B


def attention_head(x, wqkv, head_size, *, batch_block=None):
    """x: (B, T, C); wqkv: (C, 3*HP) from prepare_qkv_weights. Returns (B, T, head_size)."""
    B, T, C = x.shape
    assert wqkv.shape == (C, 3 * HP)
    if batch_block is None:
        batch_block = _default_batch_block(B)
    assert B % batch_block == 0, "B must be divisible by batch_block"
    num_blocks = B // batch_block

    x_flat = x.reshape(B * T, C)  # batch flattened into the matmul M dimension

    kernel = functools.partial(_attn_head_kernel, batch_block=batch_block, seq_len=T)

    out_flat = pl.pallas_call(
        kernel,
        out_shape=jax.ShapeDtypeStruct((B * T, HP), x.dtype),
        grid_spec=pltpu.PrefetchScalarGridSpec(
            num_scalar_prefetch=0,
            grid=(num_blocks,),
            in_specs=[
                # x rows for this batch block.
                pl.BlockSpec((batch_block * T, C), lambda i: (i, 0)),
                # Fused, padded QKV weight: constant block index -> stays resident
                # across grid steps instead of being re-DMA'd per block.
                pl.BlockSpec((C, 3 * HP), lambda i: (0, 0)),
            ],
            out_specs=pl.BlockSpec((batch_block * T, HP), lambda i: (i, 0)),
        ),
        compiler_params=pltpu.CompilerParams(
            dimension_semantics=("parallel",),
        ),
    )(x_flat, wqkv)

    return out_flat[:, :head_size].reshape(B, T, head_size)


def attention_head_ref(x, wk, wq, wv):
    """Pure-JAX f32 reference matching the PyTorch forward."""
    B, T, C = x.shape
    k = x @ wk
    q = x @ wq
    v = x @ wv
    wei = (q @ jnp.swapaxes(k, -2, -1)) * (C ** -0.5)
    mask = jnp.tril(jnp.ones((T, T), dtype=bool))
    wei = jnp.where(mask, wei, -jnp.inf)
    wei = jax.nn.softmax(wei, axis=-1)
    return wei @ v


if __name__ == "__main__":
    # Module hyperparameters (small, consistent with the PyTorch module)
    num_embed = 32      # C
    head_size = 16      # H
    block_size = 16     # max context; T <= block_size
    B, T = 2, 8

    key = jax.random.PRNGKey(0)
    kx, kk, kq, kv = jax.random.split(key, 4)

    x = jax.random.normal(kx, (B, T, num_embed), dtype=jnp.float32)

    # nn.Linear(num_embed, head_size, bias=False) weight is (H, C); forward does x @ W.T.
    # We store the pre-transposed (C, H) version, deterministically initialized.
    bound = 1.0 / (num_embed ** 0.5)
    wk = jax.random.uniform(kk, (num_embed, head_size), jnp.float32, -bound, bound)
    wq = jax.random.uniform(kq, (num_embed, head_size), jnp.float32, -bound, bound)
    wv = jax.random.uniform(kv, (num_embed, head_size), jnp.float32, -bound, bound)

    # One-time weight prep (module init analogue): pad to 128 lanes, fold in the scale.
    wqkv = prepare_qkv_weights(wk, wq, wv)

    out = attention_head(x, wqkv, head_size)
    out = jax.block_until_ready(out)

    ref = attention_head_ref(x, wk, wq, wv)
    assert out.shape == (B, T, head_size)
    # f32 matmuls throughout; only the approx EUP reciprocal loosens the tolerance.
    assert jnp.allclose(out, ref, atol=1e-2, rtol=1e-2), "mismatch vs reference"

    print("KERNEL_OK")
</pallas_src>

<mosaic_0001>
module attributes {stable_mosaic.version = 11 : i64} {
  func.func @_attn_head_kernel(%arg0: i32, %arg1: memref<16x32xf32, #tpu.memory_space<vmem>>, %arg2: memref<32x384xf32, #tpu.memory_space<vmem>>, %arg3: memref<16x128xf32, #tpu.memory_space<vmem>>) attributes {dimension_semantics = [#tpu.dimension_semantics<parallel>], iteration_bounds = array<i64: 1>, scalar_prefetch = 0 : i64, scratch_operands = 0 : i64, tpu.core_type = #tpu.core_type<tc>, window_params = [{transform_indices = @transform_0, window_bounds = array<i64: 16, 32>}, {pipeline_mode = #tpu.pipeline_mode<synchronous>, transform_indices = @transform_1, window_bounds = array<i64: 32, 384>}, {transform_indices = @transform_2, window_bounds = array<i64: 16, 128>}]} {
    %c0 = arith.constant 0 : index
    %c0_0 = arith.constant 0 : index
    %0 = vector.load %arg1[%c0, %c0_0] : memref<16x32xf32, #tpu.memory_space<vmem>>, vector<16x32xf32>
    %c0_1 = arith.constant 0 : index
    %c0_2 = arith.constant 0 : index
    %1 = vector.load %arg2[%c0_1, %c0_2] : memref<32x384xf32, #tpu.memory_space<vmem>>, vector<32x384xf32>
    %cst = arith.constant dense<0.000000e+00> : vector<16x384xf32>
    %2 = tpu.matmul %0, %1, %cst {dimension_numbers = #tpu.dot_dimension_numbers<[1], [0], [0], [1], [0, 0, 1, 1], [], []>} : vector<16x32xf32>, vector<32x384xf32>, vector<16x384xf32> -> vector<16x384xf32>
    %3 = vector.shape_cast %2 : vector<16x384xf32> to vector<2x8x384xf32>
    %4 = vector.extract_strided_slice %3 {offsets = [0, 0, 0], sizes = [2, 8, 128], strides = [1, 1, 1]} : vector<2x8x384xf32> to vector<2x8x128xf32>
    %5 = vector.extract_strided_slice %3 {offsets = [0, 0, 128], sizes = [2, 8, 128], strides = [1, 1, 1]} : vector<2x8x384xf32> to vector<2x8x128xf32>
    %6 = vector.extract_strided_slice %3 {offsets = [0, 0, 256], sizes = [2, 8, 128], strides = [1, 1, 1]} : vector<2x8x384xf32> to vector<2x8x128xf32>
    "tpu.trace_start"() <{level = 10 : i32, message = "bqh,bkh->bqk"}> : () -> ()
    %cst_3 = arith.constant dense<0.000000e+00> : vector<2x8x8xf32>
    %7 = tpu.matmul %5, %4, %cst_3 {dimension_numbers = #tpu.dot_dimension_numbers<[2], [2], [1], [1], [0, 0, 0, 1, 1, 1], [0], [0]>} : vector<2x8x128xf32>, vector<2x8x128xf32>, vector<2x8x8xf32> -> vector<2x8x8xf32>
    "tpu.trace_stop"() : () -> ()
    %8 = tpu.iota {dimensions = array<i32: 0>} : vector<8x8xi32>
    %9 = tpu.iota {dimensions = array<i32: 1>} : vector<8x8xi32>
    %10 = arith.cmpi sle, %9, %8 : vector<8x8xi32>
    %11 = vector.shape_cast %10 : vector<8x8xi1> to vector<1x8x8xi1>
    %cst_4 = arith.constant -1.000000e+30 : f32
    %12 = vector.shape_cast %11 : vector<1x8x8xi1> to vector<1x8x8xi1>
    %13 = vector.broadcast %12 : vector<1x8x8xi1> to vector<2x8x8xi1>
    %14 = vector.broadcast %cst_4 : f32 to vector<2x8x8xf32>
    %15 = arith.select %13, %7, %14 : vector<2x8x8xi1>, vector<2x8x8xf32>
    %cst_5 = arith.constant dense<0xFF800000> : vector<2x8xf32>
    %16 = vector.multi_reduction <maximumf>, %15, %cst_5 [2] : vector<2x8x8xf32> to vector<2x8xf32>
    %17 = vector.shape_cast %16 : vector<2x8xf32> to vector<2x8x1xf32>
    %18 = vector.broadcast %17 : vector<2x8x1xf32> to vector<2x8x8xf32>
    %19 = arith.subf %15, %18 : vector<2x8x8xf32>
    %20 = math.exp %19 : vector<2x8x8xf32>
    %cst_6 = arith.constant dense<0.000000e+00> : vector<2x8xf32>
    %21 = vector.multi_reduction <add>, %20, %cst_6 [2] : vector<2x8x8xf32> to vector<2x8xf32>
    %22 = vector.shape_cast %21 : vector<2x8xf32> to vector<2x8x1xf32>
    %23 = tpu.reciprocal %22 {approx = true} : vector<2x8x1xf32> -> vector<2x8x1xf32>
    %24 = vector.broadcast %23 : vector<2x8x1xf32> to vector<2x8x8xf32>
    %25 = arith.mulf %20, %24 : vector<2x8x8xf32>
    "tpu.trace_start"() <{level = 10 : i32, message = "bqk,bkh->bqh"}> : () -> ()
    %cst_7 = arith.constant dense<0.000000e+00> : vector<2x8x128xf32>
    %26 = tpu.matmul %25, %6, %cst_7 {dimension_numbers = #tpu.dot_dimension_numbers<[2], [1], [1], [2], [0, 0, 0, 1, 1, 2], [0], [0]>} : vector<2x8x8xf32>, vector<2x8x128xf32>, vector<2x8x128xf32> -> vector<2x8x128xf32>
    "tpu.trace_stop"() : () -> ()
    %27 = vector.shape_cast %26 : vector<2x8x128xf32> to vector<16x128xf32>
    %c0_8 = arith.constant 0 : index
    %c0_9 = arith.constant 0 : index
    %28 = vector.load %arg3[%c0_8, %c0_9] : memref<16x128xf32, #tpu.memory_space<vmem>>, vector<16x128xf32>
    tpu.vector_store %arg3[%c0_8, %c0_9], %27 {strides = array<i32>} : memref<16x128xf32, #tpu.memory_space<vmem>>, vector<16x128xf32>,
    return
  }
  func.func @transform_0(%arg0: i32) -> (i32, i32) {
    %c0_i32 = arith.constant 0 : i32
    %c0_i32_0 = arith.constant 0 : i32
    return %arg0, %c0_i32 : i32, i32
  }
  func.func @transform_1(%arg0: i32) -> (i32, i32) {
    %c0_i32 = arith.constant 0 : i32
    %c0_i32_0 = arith.constant 0 : i32
    %c0_i32_1 = arith.constant 0 : i32
    return %c0_i32, %c0_i32_0 : i32, i32
  }
  func.func @transform_2(%arg0: i32) -> (i32, i32) {
    %c0_i32 = arith.constant 0 : i32
    %c0_i32_0 = arith.constant 0 : i32
    return %arg0, %c0_i32 : i32, i32
  }
}

</mosaic_0001>

<bundles_post_ra>
// kernel: tpu_custom_call.1
= control target key start
LH: loop header
LB: loop body
LE: loop exit
PB: predicated region body
PF: predicated region fallthrough
CT: control target
= control target key end

     0   :  { %7 = vsyncpa [#allocation3], 0  ;;  %s424_s0 = inlined_call_operand.hbm [shape: f32[16,32], index: 0, kind: input, shape index: {}]   ;;  %s425_s1 = inlined_call_operand.hbm [shape: f32[32,384], index: 1, kind: input, shape index: {}]   ;;  %s426_s2 = inlined_call_operand.hbm [shape: f32[16,128], index: 2, kind: output, shape index: {}]  }
   0x1   :  { %8 = vsyncpa [#allocation6], 0 }
   0x2   :  { %9 = vsyncpa [#allocation4], 0  ;;  %s14_s11 = sshll.u32 %s424_s0, 4  ;;  %s375_s12 = smov [#allocation2]   ;;  %s15_s11 = int_to_ptr.hbm [resolvable:$true] %s14_s11 }
   0x3   :  { %s16_s13 = sshll.u32 %s375_s12, 4  ;;  %s27_s16 = sshll.u32 %s425_s1, 4  ;;  %s17_s13 = int_to_ptr.vmem [resolvable:$true] %s16_s13  ;;  %s28_s16 = int_to_ptr.hbm [resolvable:$true] %s27_s16 }
   0x4   :  { %s376_s17 = smov 128   ;;  %s377_s18 = smov 8  }
   0x5   :  { %22 = dma.hbm_to_vmem [thread:$0]  %s15_s11, 256, %s17_s13, [#allocation3], %s376_s17, %s376_s17, %s377_s18  }
   0x6   :  { %s378_s19 = smov [#allocation5]   ;;  %s379_s21 = smov 384  }
   0x7   :  { %s29_s20 = sshll.u32 %s378_s19, 4  ;;  %s380_s0 = smov 24   ;;  %s30_s20 = int_to_ptr.vmem [resolvable:$true] %s29_s20 }
   0x8   :  { %35 = dma.hbm_to_vmem [thread:$0]  %s28_s16, 1536, %s30_s20, [#allocation6], %s379_s21, %s379_s21, %s380_s0  }
   0x9   :  { %369 = dma.done.wait [#allocation3], 256  }
   0xa   :  { %370 = vsyncadd [#allocation3], 4294967040 }
   0xb   :  { %371 = dma.done.wait [#allocation6], 1536  }
   0xc   :  { %372 = vsyncadd [#allocation6], 4294965760  ;;  %v55_v0 = vld [vmem:[#allocation5 + $0x48] sm:$0xff]  ;;  %v52_v1 = vld [vmem:[#allocation5 + $0x30] sm:$0xff]  ;;  %vm58_vm0 = vcmask 261120   ;;  %v174_v18 = vlaneseq  ;;  %vm183_vm2 = vcmask 64512  }
   0xd   :  { %v56_v2 = vld [vmem:[#allocation5 + $0x50] sm:$0xff]  ;;  %77 = vmatpush.msra.mxu0 %v55_v0  ;;  %v53_v3 = vld [vmem:[#allocation5 + $0x38] sm:$0xff]  ;;  %v50_v5 = vld [vmem:[#allocation5 + $0x20] sm:$0xff]  ;;  %s381_s1 = smov [#allocation7]   ;;  %s260_s25 = sshll.u32 %s426_s2, 4  ;;  %s261_s25 = int_to_ptr.hbm [resolvable:$true] %s260_s25 }
   0xe   :  { %100 = vmatpush.msra.mxu1 %v56_v2  ;;  %v49_v4 = vld [vmem:[#allocation5 + $0x18] sm:$0xff]  ;;  %v46_v6 = vld [vmem:[#allocation5] sm:$0xff]  ;;  %v47_v7 = vld [vmem:[#allocation5 + $0x8] sm:$0xff]  ;;  %v175_v19 = vshrl.u32 %v174_v18, 7  ;;  %v177_v20 = vand.u32 127, %v174_v18  ;;  %s258_s22 = sshll.u32 %s381_s1, 4  ;;  %s259_s22 = int_to_ptr.vmem [resolvable:$true] %s258_s22 }
   0xf   :  { %78 = vmatpush.msra.mxu0 %v52_v1  ;;  %v44_v8 = vld [vmem:[#allocation2] sm:$0xff]  ;;  %v45_v9 = vld [vmem:[#allocation2 + $0x8] sm:$0xff]  ;;  %v54_v15 = vld [vmem:[#allocation5 + $0x40] sm:$0xff] }
  0x10   :  { %101 = vmatpush.msra.mxu1 %v53_v3  ;;  %v57_v14 = vld [vmem:[#allocation5 + $0x58] sm:$0xff]  ;;  %v51_v16 = vld [vmem:[#allocation5 + $0x28] sm:$0xff]  ;;  %v48_v17 = vld [vmem:[#allocation5 + $0x10] sm:$0xff]  ;;  %vm178_vm1 = vcmp.le.s32.totalorder %v177_v20, %v175_v19 }
  0x11   :  { %79 = vmatpush.msra.mxu0 %v49_v4  ;;  %123 = vmatpush.msra.mxu2 %v57_v14 }
  0x12   :  { %102 = vmatpush.msra.mxu1 %v50_v5 }
  0x13   :  { %80 = vmatpush.msra.mxu0 %v46_v6  ;;  %124 = vmatpush.msra.mxu2 %v54_v15 }
  0x14   :  { %103 = vmatpush.msra.mxu1 %v47_v7  ;;  %274 = vmatmul.msk.f32.vlgmr.msra.gmra.mxu0 %vm58_vm0, %v44_v8 }
  0x15   :  { %276 = vmatmul.msk.f32.vlgmr.msra.gmra.mxu1 %vm58_vm0, %v44_v8  ;;  %125 = vmatpush.msra.mxu2 %v51_v16 }
  0x17   :  { %126 = vmatpush.msra.mxu2 %v48_v17 }
  0x18   :  { %278 = vmatmul.msk.f32.vlgmr.msra.gmra.mxu2 %vm58_vm0, %v44_v8 }
  0x1c   :  { %275 = vmatmul.msk.f32.gmra.mxu0 %vm58_vm0, %v45_v9 }
  0x1d   :  { %277 = vmatmul.msk.f32.gmra.mxu1 %vm58_vm0, %v45_v9 }
  0x20   :  { %279 = vmatmul.msk.f32.gmra.mxu2 %vm58_vm0, %v45_v9 }
  0x91   :  { %v82_v10 = vpop.f32.mrf.mxu0 }
  0x92   :  { %v105_v11 = vpop.f32.mrf.mxu1  ;;  %149 = vmatpush.xpose.msra.mxu3 %v82_v10 }
  0x95   :  { %150 = vmatmul.f32.vlgmr.msra.gmra.mxu3 %v105_v11 }
  0x99   :  { %v85_v12 = vpop.f32.mrf.mxu0 }
  0x9a   :  { %169 = vmatpush.xpose.msrb.mxu3 %v85_v12  ;;  %v108_v13 = vpop.f32.mrf.mxu1 }
  0x9b   :  { %v128_v28 = vpop.f32.mrf.mxu2 }
  0x9d   :  { %170 = vmatmul.f32.vlgmr.msrb.gmra.mxu3 %v108_v13 }
  0x9e   :  { %224 = vmatpush.msra.mxu3 %v128_v28 }
  0xa3   :  { %v131_v38 = vpop.f32.mrf.mxu2 }
  0xa4   :  { %247 = vmatpush.msrb.mxu0 %v131_v38 }
 0x118   :  { %v151_v21 = vpop.f32.mrf.mxu3 }
 0x119   :  { %v181_v22 = vsel %vm178_vm1, %v151_v21, -1e+30 }
 0x11a   :  { %v184_v23 = vsel %vm183_vm2, %v181_v22, -inf }
 0x11b   :  { %185 = vmax.xlane.f32.xlu0 %v184_v23 }
 0x120   :  { %v171_v24 = vpop.f32.mrf.mxu3 }
 0x121   :  { %v182_v25 = vsel %vm178_vm1, %v171_v24, -1e+30 }
 0x122   :  { %v187_v26 = vsel %vm183_vm2, %v182_v25, -inf }
 0x123   :  { %188 = vmax.xlane.f32.xlu0 %v187_v26 }
 0x18e   :  { %v186_v27 = vpop.xlane.xlu0 %185 }
 0x18f   :  { %v190_v29 = vsub.f32 %v181_v22, %v186_v27 }
 0x191   :  { %v192_v30 = vmul.f32 1.442695, %v190_v29 }
 0x193   :  { %289 = vpow2.f32 %v192_v30 }
 0x196   :  { %v189_v31 = vpop.xlane.xlu0 %188 }
 0x197   :  { %v191_v32 = vsub.f32 %v182_v25, %v189_v31 }
 0x199   :  { %v290_v33 = vpop.eup %289  ;;  %v194_v34 = vmul.f32 1.442695, %v191_v32 }
 0x19a   :  { %v196_v35 = vsel %vm183_vm2, %v290_v33, 0.0 }
 0x19b   :  { %291 = vpow2.f32 %v194_v34  ;;  %197 = vadd.xlane.f32.xlu1 %v196_v35 }
 0x1a1   :  { %v292_v36 = vpop.eup %291 }
 0x1a2   :  { %v199_v37 = vsel %vm183_vm2, %v292_v36, 0.0 }
 0x1a3   :  { %200 = vadd.xlane.f32.xlu1 %v199_v37 }
 0x20e   :  { %v198_v39 = vpop.xlane.xlu1 %197 }
 0x20f   :  { %293 = vrcp.f32 %v198_v39 }
 0x215   :  { %v294_v40 = vpop.eup %293 }
 0x216   :  { %v204_v41 = vmul.f32 %v294_v40, %v290_v33  ;;  %v201_v42 = vpop.xlane.xlu1 %200 }
 0x217   :  { %295 = vrcp.f32 %v201_v42 }
 0x218   :  { %280 = vmatmul.msk.f32.vlgmr.msra.gmra.mxu3 %vm183_vm2, %v204_v41 }
 0x21d   :  { %v296_v43 = vpop.eup %295 }
 0x21e   :  { %v205_v44 = vmul.f32 %v296_v43, %v292_v36 }
 0x220   :  { %281 = vmatmul.msk.f32.vlgmr.msrb.gmra.mxu0 %vm183_vm2, %v205_v44 }
 0x29b   :  { %v226_v45 = vpop.f32.mrf.mxu3 }
 0x29c   :  { %252 = vst [vmem:[#allocation7] sm:$0xff] %v226_v45 }
 0x29d   :  { %v249_v46 = vpop.f32.mrf.mxu0 }
 0x29e   :  { %253 = vst [vmem:[#allocation7 + $0x8] sm:$0xff] %v249_v46 }
 0x29f   :  { %266 = dma.vmem_to_hbm [thread:$0]  %s259_s22, 256, %s261_s25, [#allocation4], %s376_s17, %s376_s17, %s377_s18  }
 0x2a0   :  { %373 = dma.done.wait [#allocation4], 256  }
 0x2a1   :  { %374 = vsyncadd [#allocation4], 4294967040 }
 0x2a2   :  { %271 = vsyncpa [#allocation3], 1 }
 0x2a3   :  { %272 = vsyncpa [#allocation6], 1 }
 0x2a4   :  { %273 = vsyncpa [#allocation4], 1 }

</bundles_post_ra>
